<compile_context>
chip_gen: v7x
topology: tpu7x:2x2x1
jax: 0.10.0
libtpu: 0.0.40
codegen_flags: <defaults>
</compile_context>

<pallas_src>
import functools

import jax
import jax.numpy as jnp
from jax import lax
from jax.experimental import pallas as pl
from jax.experimental.pallas import tpu as pltpu

# ---------------- problem sizes (small, consistent with the module) ----------
B = 2            # batch (len(img_name))
L = 8            # latent "layers"   (stand-in for e4e W+ 18)
D = 32           # latent width      (stand-in for 512)
K = L * D        # flattened latent
C, H, W = 3, 16, 16
F = C * H * W    # flattened generated image (NCHW order)
CHANNELS = [(2, 5), (6, 17)]          # self.channels
E = 1 + 2 * len(CHANNELS)             # ensemble size (base + +/- per channel)
NUM_CLASSES = 2
NB = 3           # independent image batches fused into one pallas_call


# ---------------- fused Pallas kernel ----------------------------------------
def ensemble_kernel(lat_ref, wg_ref, bg_ref, wcd_ref, bcd_ref, out_ref, mem_ref, *,
                    channels, lat_width, ens):
    # lat_ref: (B, K)   bf16  base latents of this image batch
    # wg_ref : (K, F)   bf16  synthetic generator weights   (TODO(synk): real StyleGAN gen_im)
    # bg_ref : (1, F)   f32
    # wcd_ref: (1, F)   f32   classifier logit-difference vector (wc[:,0]-wc[:,1])
    #                         (TODO(synk): real MobileNetV2)
    # bcd_ref: (1, 1)   f32   classifier bias difference
    # out_ref: (B, 2)   f32   ensemble-averaged class probabilities
    # mem_ref: (MP, F)  f32   scratch: distinct ensemble-member pre-activations
    b = out_ref.shape[0]
    n_mem = b + 2 * len(channels)          # distinct ensemble-member rows
    mp, f = mem_ref.shape                  # sublane-padded row count

    # "gen_im" pre-activation for the B *base* latents (bf16 MXU, f32 accum).
    pre = jnp.dot(lat_ref[...], wg_ref[...],
                  preferred_element_type=jnp.float32) + bg_ref[...]        # (B, F)
    mem_ref[0:b, :] = pre

    # Ensemble members: only sample 0 is perturbed, and only one latent
    # coordinate changes, so by linearity of the generator matmul
    #   gen(lat0 +/- 10*e_r) = pre0 +/- 10 * w_gen[r, :]
    pre0 = pre[0:1, :]
    for i, (c0, c1) in enumerate(channels):                # static unroll, E small
        r = c0 * lat_width + c1
        delta = wg_ref[r:r + 1, :].astype(jnp.float32) * 10.0              # (1, F)
        mem_ref[b + 2 * i:b + 2 * i + 1, :] = pre0 + delta
        mem_ref[b + 2 * i + 1:b + 2 * i + 2, :] = pre0 - delta
    if mp > n_mem:                                          # zero sublane padding
        mem_ref[n_mem:mp, :] = jnp.zeros((mp - n_mem, f), jnp.float32)

    # Single batched classifier pass over all member rows (one tanh / reduce /
    # sigmoid over a full sublane-aligned block).  2-class softmax collapsed to
    # the sigmoid of the logit difference: softmax([l0, l1])[0] == sigmoid(l0-l1).
    imgs = jnp.tanh(mem_ref[...])                                          # EUP
    d = jnp.sum(imgs * wcd_ref[...], axis=-1, keepdims=True) + bcd_ref[...]
    p0_all = jax.nn.sigmoid(d)                                             # (MP, 1)

    p0_base = p0_all[0:b, :]                                               # (B, 1)
    # Sample 0: mean over its E ensemble members (base + 2*len(channels) perturbed).
    p0_sum = p0_all[0:1, :] + jnp.sum(p0_all[b:n_mem, :], axis=0, keepdims=True)
    mean0 = p0_sum * (1.0 / ens)                                           # (1, 1)

    # Samples b>0: all E ensemble members are identical -> mean == base prob.
    row_ids = lax.broadcasted_iota(jnp.int32, (b, 1), 0)
    p0_out = jnp.where(row_ids == 0, mean0, p0_base)                       # (B, 1)

    # Assemble (B, 2) probabilities: p1 = 1 - p0.
    col_ids = lax.broadcasted_iota(jnp.int32, (b, NUM_CLASSES), 1)
    out = jnp.where(col_ids == 0, p0_out, 1.0 - p0_out)                    # (B, 2)
    out_ref[...] = out.astype(out_ref.dtype)


# ---------------- wrapper ------------------------------------------------------
def ensemble_forward(latents, w_gen, b_gen, w_cls, b_cls, channels):
    """latents: (NB, B, L, D) stack of image batches, or (B, L, D) for one batch.

    Returns ensemble-averaged class probabilities: (NB, B, 2) or (B, 2).
    """
    single = latents.ndim == 3
    if single:
        latents = latents[None]
    nb, bsz, l, d = latents.shape
    k, f = w_gen.shape
    ens = 1 + 2 * len(channels)
    n_mem = bsz + 2 * len(channels)            # distinct ensemble-member rows
    mp = max(8, pl.cdiv(n_mem, 8) * 8)         # sublane-aligned scratch rows

    # bf16 MXU inputs (halves the dominant w_gen DMA); accumulation and all
    # nonlinear / averaging math stays f32.
    lat = latents.reshape(nb, bsz, k).astype(jnp.bfloat16)
    wg = w_gen.astype(jnp.bfloat16)
    bg = b_gen.reshape(1, f).astype(jnp.float32)
    # Fold the 2-class classifier into a single logit-difference vector.
    wcd = (w_cls[:, 0] - w_cls[:, 1]).reshape(1, f).astype(jnp.float32)
    bcd = (b_cls.reshape(-1)[0] - b_cls.reshape(-1)[1]).reshape(1, 1).astype(jnp.float32)

    kernel = functools.partial(ensemble_kernel, channels=tuple(channels),
                               lat_width=d, ens=ens)

    # TODO(synk): when real StyleGAN / MobileNetV2 weights replace the stand-ins,
    # tile K/F here with sizes derived from pltpu.get_tpu_info().vmem_capacity_bytes
    # (64 MiB on v7x vs 128 MiB on v5e/v6e) instead of loading whole weights.
    out = pl.pallas_call(
        kernel,
        out_shape=jax.ShapeDtypeStruct((nb, bsz, NUM_CLASSES), jnp.float32),
        grid=(nb,),
        in_specs=[
            pl.BlockSpec((None, bsz, k), lambda i: (i, 0, 0)),   # per-batch latents
            pl.BlockSpec((k, f), lambda i: (0, 0)),              # weights stay VMEM-resident
            pl.BlockSpec((1, f), lambda i: (0, 0)),
            pl.BlockSpec((1, f), lambda i: (0, 0)),
            pl.BlockSpec((1, 1), lambda i: (0, 0)),
        ],
        out_specs=pl.BlockSpec((None, bsz, NUM_CLASSES), lambda i: (i, 0, 0)),
        scratch_shapes=[pltpu.VMEM((mp, f), jnp.float32)],       # ensemble-member block
        compiler_params=pltpu.CompilerParams(
            dimension_semantics=("parallel",)),    # megacore / v7x second TC
    )(lat, wg, bg, wcd, bcd)
    return out[0] if single else out


# ---------------- pure-JAX reference (original module semantics, f32) --------
def ensemble_forward_ref(latents, w_gen, b_gen, w_cls, b_cls, channels):
    bsz = latents.shape[0]
    e = 1 + 2 * len(channels)
    manip = [latents]
    for (c0, c1) in channels:
        manip.append(latents.at[0, c0, c1].add(10.0))
        manip.append(latents.at[0, c0, c1].add(-10.0))
    lat = jnp.concatenate(manip, axis=0).reshape(e * bsz, -1)
    imgs = jnp.tanh(lat @ w_gen + b_gen)
    logits = imgs @ w_cls + b_cls
    probs = jax.nn.softmax(logits, axis=-1)
    return jnp.mean(probs.reshape(e, bsz, NUM_CLASSES), axis=0)


if __name__ == "__main__":
    key = jax.random.PRNGKey(0)
    k1, k2, k3, k4, k5 = jax.random.split(key, 5)

    # deterministic synthetic parameters / inputs
    latents = jax.random.normal(k1, (NB, B, L, D), jnp.float32)
    w_gen = jax.random.normal(k2, (K, F), jnp.float32) * 0.05
    b_gen = jax.random.normal(k3, (1, F), jnp.float32) * 0.01
    w_cls = jax.random.normal(k4, (F, NUM_CLASSES), jnp.float32) * 0.05
    b_cls = jax.random.normal(k5, (1, NUM_CLASSES), jnp.float32) * 0.01

    # fused multi-batch call (grid over NB independent image batches)
    out = ensemble_forward(latents, w_gen, b_gen, w_cls, b_cls, CHANNELS)
    out = jax.block_until_ready(out)
    assert out.shape == (NB, B, NUM_CLASSES)

    # check each image batch against the f32 reference of the original module
    # (tolerance loosened for the bf16 MXU inputs)
    for i in range(NB):
        ref = ensemble_forward_ref(latents[i], w_gen, b_gen, w_cls, b_cls, CHANNELS)
        assert jnp.allclose(out[i], ref, atol=1e-2, rtol=1e-2), (out[i], ref)
    assert jnp.allclose(jnp.sum(out, axis=-1), 1.0, atol=1e-5)

    # single-image-batch path (matches the module's forward(img_name) signature)
    out1 = ensemble_forward(latents[0], w_gen, b_gen, w_cls, b_cls, CHANNELS)
    out1 = jax.block_until_ready(out1)
    ref1 = ensemble_forward_ref(latents[0], w_gen, b_gen, w_cls, b_cls, CHANNELS)
    assert out1.shape == (B, NUM_CLASSES)
    assert jnp.allclose(out1, ref1, atol=1e-2, rtol=1e-2)

    print("KERNEL_OK")
</pallas_src>

<mosaic_0001>
module attributes {stable_mosaic.version = 11 : i64} {
  func.func @ensemble_kernel(%arg0: i32, %arg1: memref<1x2x256xbf16, #tpu.memory_space<vmem>>, %arg2: memref<256x768xbf16, #tpu.memory_space<vmem>>, %arg3: memref<1x768xf32, #tpu.memory_space<vmem>>, %arg4: memref<1x768xf32, #tpu.memory_space<vmem>>, %arg5: memref<1x1xf32, #tpu.memory_space<vmem>>, %arg6: memref<1x2x2xf32, #tpu.memory_space<vmem>>, %arg7: memref<8x768xf32, #tpu.memory_space<vmem>>) attributes {dimension_semantics = [#tpu.dimension_semantics<parallel>], iteration_bounds = array<i64: 3>, scalar_prefetch = 0 : i64, scratch_operands = 1 : i64, tpu.core_type = #tpu.core_type<tc>, window_params = [{transform_indices = @transform_0, window_bounds = array<i64: 1, 2, 256>}, {pipeline_mode = #tpu.pipeline_mode<synchronous>, transform_indices = @transform_1, window_bounds = array<i64: 256, 768>}, {pipeline_mode = #tpu.pipeline_mode<synchronous>, transform_indices = @transform_2, window_bounds = array<i64: 1, 768>}, {pipeline_mode = #tpu.pipeline_mode<synchronous>, transform_indices = @transform_3, window_bounds = array<i64: 1, 768>}, {pipeline_mode = #tpu.pipeline_mode<synchronous>, transform_indices = @transform_4, window_bounds = array<i64: 1, 1>}, {transform_indices = @transform_5, window_bounds = array<i64: 1, 2, 2>}]} {
    %c0 = arith.constant 0 : index
    %c0_0 = arith.constant 0 : index
    %c0_1 = arith.constant 0 : index
    %0 = vector.load %arg1[%c0, %c0_0, %c0_1] : memref<1x2x256xbf16, #tpu.memory_space<vmem>>, vector<1x2x256xbf16>
    %1 = vector.shape_cast %0 : vector<1x2x256xbf16> to vector<2x256xbf16>
    %c0_2 = arith.constant 0 : index
    %c0_3 = arith.constant 0 : index
    %2 = vector.load %arg2[%c0_2, %c0_3] : memref<256x768xbf16, #tpu.memory_space<vmem>>, vector<256x768xbf16>
    %cst = arith.constant dense<0.000000e+00> : vector<2x768xf32>
    %3 = tpu.matmul %1, %2, %cst {dimension_numbers = #tpu.dot_dimension_numbers<[1], [0], [0], [1], [0, 0, 1, 1], [], []>} : vector<2x256xbf16>, vector<256x768xbf16>, vector<2x768xf32> -> vector<2x768xf32>
    %c0_4 = arith.constant 0 : index
    %c0_5 = arith.constant 0 : index
    %4 = vector.load %arg3[%c0_4, %c0_5] : memref<1x768xf32, #tpu.memory_space<vmem>>, vector<1x768xf32>
    %5 = vector.broadcast %4 : vector<1x768xf32> to vector<2x768xf32>
    %6 = arith.addf %3, %5 : vector<2x768xf32>
    %c0_6 = arith.constant 0 : index
    %c0_7 = arith.constant 0 : index
    %7 = vector.load %arg7[%c0_6, %c0_7] : memref<8x768xf32, #tpu.memory_space<vmem>>, vector<2x768xf32>
    tpu.vector_store %arg7[%c0_6, %c0_7], %6 {strides = array<i32>} : memref<8x768xf32, #tpu.memory_space<vmem>>, vector<2x768xf32>,
    %8 = vector.extract_strided_slice %6 {offsets = [0, 0], sizes = [1, 768], strides = [1, 1]} : vector<2x768xf32> to vector<1x768xf32>
    %c69 = arith.constant 69 : index
    %c0_8 = arith.constant 0 : index
    %9 = vector.load %arg2[%c69, %c0_8] : memref<256x768xbf16, #tpu.memory_space<vmem>>, vector<1x768xbf16>
    %10 = arith.extf %9 : vector<1x768xbf16> to vector<1x768xf32>
    %cst_9 = arith.constant 1.000000e+01 : f32
    %11 = vector.broadcast %cst_9 : f32 to vector<1x768xf32>
    %12 = arith.mulf %10, %11 : vector<1x768xf32>
    %13 = arith.addf %8, %12 : vector<1x768xf32>
    %c2 = arith.constant 2 : index
    %c0_10 = arith.constant 0 : index
    %14 = vector.load %arg7[%c2, %c0_10] : memref<8x768xf32, #tpu.memory_space<vmem>>, vector<1x768xf32>
    tpu.vector_store %arg7[%c2, %c0_10], %13 {strides = array<i32>} : memref<8x768xf32, #tpu.memory_space<vmem>>, vector<1x768xf32>,
    %15 = arith.subf %8, %12 : vector<1x768xf32>
    %c3 = arith.constant 3 : index
    %c0_11 = arith.constant 0 : index
    %16 = vector.load %arg7[%c3, %c0_11] : memref<8x768xf32, #tpu.memory_space<vmem>>, vector<1x768xf32>
    tpu.vector_store %arg7[%c3, %c0_11], %15 {strides = array<i32>} : memref<8x768xf32, #tpu.memory_space<vmem>>, vector<1x768xf32>,
    %c209 = arith.constant 209 : index
    %c0_12 = arith.constant 0 : index
    %17 = vector.load %arg2[%c209, %c0_12] : memref<256x768xbf16, #tpu.memory_space<vmem>>, vector<1x768xbf16>
    %18 = arith.extf %17 : vector<1x768xbf16> to vector<1x768xf32>
    %cst_13 = arith.constant 1.000000e+01 : f32
    %19 = vector.broadcast %cst_13 : f32 to vector<1x768xf32>
    %20 = arith.mulf %18, %19 : vector<1x768xf32>
    %21 = arith.addf %8, %20 : vector<1x768xf32>
    %c4 = arith.constant 4 : index
    %c0_14 = arith.constant 0 : index
    %22 = vector.load %arg7[%c4, %c0_14] : memref<8x768xf32, #tpu.memory_space<vmem>>, vector<1x768xf32>
    tpu.vector_store %arg7[%c4, %c0_14], %21 {strides = array<i32>} : memref<8x768xf32, #tpu.memory_space<vmem>>, vector<1x768xf32>,
    %23 = arith.subf %8, %20 : vector<1x768xf32>
    %c5 = arith.constant 5 : index
    %c0_15 = arith.constant 0 : index
    %24 = vector.load %arg7[%c5, %c0_15] : memref<8x768xf32, #tpu.memory_space<vmem>>, vector<1x768xf32>
    tpu.vector_store %arg7[%c5, %c0_15], %23 {strides = array<i32>} : memref<8x768xf32, #tpu.memory_space<vmem>>, vector<1x768xf32>,
    %cst_16 = arith.constant 0.000000e+00 : f32
    %25 = vector.broadcast %cst_16 : f32 to vector<2x768xf32>
    %c6 = arith.constant 6 : index
    %c0_17 = arith.constant 0 : index
    %26 = vector.load %arg7[%c6, %c0_17] : memref<8x768xf32, #tpu.memory_space<vmem>>, vector<2x768xf32>
    tpu.vector_store %arg7[%c6, %c0_17], %25 {strides = array<i32>} : memref<8x768xf32, #tpu.memory_space<vmem>>, vector<2x768xf32>,
    %c0_18 = arith.constant 0 : index
    %c0_19 = arith.constant 0 : index
    %27 = vector.load %arg7[%c0_18, %c0_19] : memref<8x768xf32, #tpu.memory_space<vmem>>, vector<8x768xf32>
    %28 = math.tanh %27 : vector<8x768xf32>
    %c0_20 = arith.constant 0 : index
    %c0_21 = arith.constant 0 : index
    %29 = vector.load %arg4[%c0_20, %c0_21] : memref<1x768xf32, #tpu.memory_space<vmem>>, vector<1x768xf32>
    %30 = vector.broadcast %29 : vector<1x768xf32> to vector<8x768xf32>
    %31 = arith.mulf %28, %30 : vector<8x768xf32>
    %cst_22 = arith.constant dense<0.000000e+00> : vector<8xf32>
    %32 = vector.multi_reduction <add>, %31, %cst_22 [1] : vector<8x768xf32> to vector<8xf32>
    %33 = vector.shape_cast %32 : vector<8xf32> to vector<8x1xf32>
    %c0_23 = arith.constant 0 : index
    %c0_24 = arith.constant 0 : index
    %34 = vector.load %arg5[%c0_23, %c0_24] : memref<1x1xf32, #tpu.memory_space<vmem>>, vector<1x1xf32>
    %35 = vector.broadcast %34 : vector<1x1xf32> to vector<8x1xf32>
    %36 = arith.addf %33, %35 : vector<8x1xf32>
    %37 = arith.negf %36 : vector<8x1xf32>
    %38 = math.exp %37 : vector<8x1xf32>
    %cst_25 = arith.constant 1.000000e+00 : f32
    %39 = vector.broadcast %cst_25 : f32 to vector<8x1xf32>
    %40 = arith.addf %39, %38 : vector<8x1xf32>
    %41 = arith.divf %39, %40 : vector<8x1xf32>
    %42 = vector.extract_strided_slice %41 {offsets = [0, 0], sizes = [2, 1], strides = [1, 1]} : vector<8x1xf32> to vector<2x1xf32>
    %43 = vector.extract_strided_slice %41 {offsets = [0, 0], sizes = [1, 1], strides = [1, 1]} : vector<8x1xf32> to vector<1x1xf32>
    %44 = vector.extract_strided_slice %41 {offsets = [2, 0], sizes = [4, 1], strides = [1, 1]} : vector<8x1xf32> to vector<4x1xf32>
    %cst_26 = arith.constant dense<0.000000e+00> : vector<1xf32>
    %45 = vector.multi_reduction <add>, %44, %cst_26 [0] : vector<4x1xf32> to vector<1xf32>
    %46 = vector.shape_cast %45 : vector<1xf32> to vector<1x1xf32>
    %47 = arith.addf %43, %46 : vector<1x1xf32>
    %cst_27 = arith.constant 2.000000e-01 : f32
    %48 = vector.broadcast %cst_27 : f32 to vector<1x1xf32>
    %49 = arith.mulf %47, %48 : vector<1x1xf32>
    %50 = tpu.iota {dimensions = array<i32: 0>} : vector<2x1xi32>
    %c0_i32 = arith.constant 0 : i32
    %51 = vector.broadcast %c0_i32 : i32 to vector<2x1xi32>
    %52 = arith.cmpi eq, %50, %51 : vector<2x1xi32>
    %53 = vector.shape_cast %49 : vector<1x1xf32> to vector<1x1xf32>
    %54 = vector.broadcast %53 : vector<1x1xf32> to vector<2x1xf32>
    %55 = arith.select %52, %54, %42 : vector<2x1xi1>, vector<2x1xf32>
    %56 = tpu.iota {dimensions = array<i32: 1>} : vector<2x2xi32>
    %c0_i32_28 = arith.constant 0 : i32
    %57 = vector.broadcast %c0_i32_28 : i32 to vector<2x2xi32>
    %58 = arith.cmpi eq, %56, %57 : vector<2x2xi32>
    %cst_29 = arith.constant 1.000000e+00 : f32
    %59 = vector.broadcast %cst_29 : f32 to vector<2x1xf32>
    %60 = arith.subf %59, %55 : vector<2x1xf32>
    %61 = vector.shape_cast %55 : vector<2x1xf32> to vector<2x1xf32>
    %62 = vector.broadcast %61 : vector<2x1xf32> to vector<2x2xf32>
    %63 = vector.shape_cast %60 : vector<2x1xf32> to vector<2x1xf32>
    %64 = vector.broadcast %63 : vector<2x1xf32> to vector<2x2xf32>
    %65 = arith.select %58, %62, %64 : vector<2x2xi1>, vector<2x2xf32>
    %c0_30 = arith.constant 0 : index
    %c0_31 = arith.constant 0 : index
    %c0_32 = arith.constant 0 : index
    %66 = vector.load %arg6[%c0_30, %c0_31, %c0_32] : memref<1x2x2xf32, #tpu.memory_space<vmem>>, vector<1x2x2xf32>
    %67 = vector.shape_cast %66 : vector<1x2x2xf32> to vector<2x2xf32>
    %68 = vector.shape_cast %65 : vector<2x2xf32> to vector<1x2x2xf32>
    tpu.vector_store %arg6[%c0_30, %c0_31, %c0_32], %68 {strides = array<i32>} : memref<1x2x2xf32, #tpu.memory_space<vmem>>, vector<1x2x2xf32>,
    return
  }
  func.func @transform_0(%arg0: i32) -> (i32, i32, i32) {
    %c0_i32 = arith.constant 0 : i32
    %c0_i32_0 = arith.constant 0 : i32
    %c0_i32_1 = arith.constant 0 : i32
    return %arg0, %c0_i32, %c0_i32_0 : i32, i32, i32
  }
  func.func @transform_1(%arg0: i32) -> (i32, i32) {
    %c0_i32 = arith.constant 0 : i32
    %c0_i32_0 = arith.constant 0 : i32
    %c0_i32_1 = arith.constant 0 : i32
    return %c0_i32, %c0_i32_0 : i32, i32
  }
  func.func @transform_2(%arg0: i32) -> (i32, i32) {
    %c0_i32 = arith.constant 0 : i32
    %c0_i32_0 = arith.constant 0 : i32
    %c0_i32_1 = arith.constant 0 : i32
    return %c0_i32, %c0_i32_0 : i32, i32
  }
  func.func @transform_3(%arg0: i32) -> (i32, i32) {
    %c0_i32 = arith.constant 0 : i32
    %c0_i32_0 = arith.constant 0 : i32
    %c0_i32_1 = arith.constant 0 : i32
    return %c0_i32, %c0_i32_0 : i32, i32
  }
  func.func @transform_4(%arg0: i32) -> (i32, i32) {
    %c0_i32 = arith.constant 0 : i32
    %c0_i32_0 = arith.constant 0 : i32
    %c0_i32_1 = arith.constant 0 : i32
    return %c0_i32, %c0_i32_0 : i32, i32
  }
  func.func @transform_5(%arg0: i32) -> (i32, i32, i32) {
    %c0_i32 = arith.constant 0 : i32
    %c0_i32_0 = arith.constant 0 : i32
    %c0_i32_1 = arith.constant 0 : i32
    return %arg0, %c0_i32, %c0_i32_0 : i32, i32, i32
  }
}

</mosaic_0001>

<bundles_post_ra>
// kernel: tpu_custom_call.1
= control target key start
LH: loop header
LB: loop body
LE: loop exit
PB: predicated region body
PF: predicated region fallthrough
CT: control target
= control target key end

     0   :  { %s2198_s0 = inlined_call_operand.hbm [shape: bf16[3,2,256], index: 0, kind: input, shape index: {}]   ;;  %s2199_s1 = inlined_call_operand.hbm [shape: bf16[256,768], index: 1, kind: input, shape index: {}]   ;;  %s2200_s2 = inlined_call_operand.vmem [shape: f32[1,768], index: 2, kind: input, shape index: {}]   ;;  %s2201_s3 = inlined_call_operand.vmem [shape: f32[1,768], index: 3, kind: input, shape index: {}]   ;;  %s2202_s4 = inlined_call_operand.<no memory space> [shape: f32[1,1], index: 4, kind: input, shape index: {}]   ;;  %s2203_s5 = inlined_call_operand.vmem [shape: f32[3,2,2], index: 5, kind: output, shape index: {}]  }
   0x1   :  { %v10_v0 = vstv %s2202_s4 }
   0x2   :  { %11 = vst [vmem:[#allocation3] sm:$0x1] %v10_v0 }
   0x3   :  { %12 = vsyncpa [#allocation5], 0 }
   0x4   :  { %14 = vsyncpa [#allocation5 + $0x1], 0 }
   0x5   :  { %15 = vsyncpa [#allocation7], 0  ;;  %s1973_s20 = smov 0   ;;  %s1975_s21 = smov 0  }
   0x6   :  { %s1977_s22 = smov 0   ;;  %s1979_s23 = smov 0  }
   0x7 LB: > { %s1992_s4 = sadd.s32 4294967295, %s1931_s23   ;;  %p41_p0 = scmp.ne.s32.totalorder %s1923_s21, %s1919_s20  ;;  %s1931_s23 = sphi %s1979_s23, %s2218_s23   ;;  %s1927_s22 = sphi %s1977_s22, %s2217_s22   ;;  %s1923_s21 = sphi %s1975_s21, %s2216_s21   ;;  %s1919_s20 = sphi %s1973_s20, %s2215_s20  }
   0x8   : > { %p2204_p1 = scmp.eq.s32.totalorder %s1992_s4, 0  ;;  %p1506_p2 = scmp.ge.s32.totalorder %s1931_s23, 1 }
   0x9   : > { %p162_p3 = scmp.lt.s32.totalorder %s1931_s23, 4  ;;  %s1933_s26 = smov [#allocation6]  }
   0xa   : > { %p2000_p4 = por %p2204_p1, %p41_p0  ;;  %s174_s27 = sshll.u32 %s1933_s26, 4  ;;  %s175_s27 = int_to_ptr.vmem [resolvable:$true] %s174_s27 }
   0xb   : > { %p2004_p5 = pnand %p1506_p2, %p162_p3  ;;  %s2017_s29 = sadd.s32 1, %s1931_s23  }
   0xc   : > { %s2207_s24 = scalar_select %p2000_p4, 1, 0 }
   0xd   : > { %s2208_s25 = scalar_select %p2004_p5, 1, 0 }
   0xe   : > { %p1624_p6 = pneg %p2004_p5  ;;  %s28_s30 = sadd.s32 1, %s1927_s22 }
   0xf   : > { %s25_s6 = ssub.s32 %s1931_s23, %s2017_s29  ;;  %s1835_s9 = scalar_lea.hbm %s2199_s1, 12288 }
  0x10   : > { %p2012_p7 = pnand %p1624_p6, %p2204_p1  ;;  %p1836_p8 = scmp.ne.s32.totalorder %s2199_s1, %s1835_s9 }
  0x11   : > { %p1842_p12 = scmp.lt.u32.totalorder %s1835_s9, %s2199_s1 }
  0x12   : > { %p1837_p9 = pneg %p2012_p7 }
  0x14   : > { %p1838_p10 = pnand %p1837_p9, %p1836_p8 }
  0x16   : > { %p1839_p11 = pneg %p1838_p10 }
  0x18   : > { %p1844_p13 = pnand %p1842_p12, %p1839_p11 }
  0x1a   : > { %1847 = shalt.err (!%p1844_p13)
}
  0x1b   : > { %s1848_s14 = scalar_lea.vmem %s175_s27, 12288  ;;  %p1856_p6 = scmp.lt.s32.totalorder %s175_s27, %s175_s27 }
  0x1c   : > { %p1849_p0 = scmp.ne.s32.totalorder %s175_s27, %s1848_s14  ;;  %p1857_p1 = scmp.lt.s32.totalorder %s1848_s14, %s1848_s14 }
  0x1e   : > { %p1851_p2 = pnand %p1849_p0, %p1837_p9  ;;  %p1858_p4 = por %p1857_p1, %p1856_p6 }
  0x20   : > { %p1852_p3 = pneg %p1851_p2 }
  0x22   : > { %p1859_p5 = pnand %p1858_p4, %p1852_p3 }
  0x24   : > { %1862 = shalt.err (!%p1859_p5)
}
  0x25   : > { %s1934_s15 = smov 384   ;;  %s1935_s16 = smov 24  }
  0x26   : > { %1627 = dma.hbm_to_vmem [thread:$0]  (!%p2012_p7), %s2199_s1, 12288, %s175_s27, [#allocation7], %s1934_s15, %s1934_s15, %s1935_s16  }
  0x27   : > { %p26_p8 = scmp.eq.s32.totalorder %s25_s6, 0  ;;  %p35_p9 = scmp.ne.s32.totalorder %s1927_s22, %s1923_s21 }
  0x28   : > { %p36_p1 = scmp.eq.s32.totalorder %s1931_s23, 0  ;;  %p1633_p4 = scmp.lt.s32.totalorder %s1931_s23, 3 }
  0x29   : > { %s2043_s19 = scalar_select %p26_p8, %s1927_s22, %s28_s30  }
  0x2a   : > { %p37_p5 = por %p36_p1, %p35_p9  ;;  %s197_s20 = sand.u32 1, %s1927_s22  }
  0x2b   : > { %s1509_s26 = sshll.u32 %s197_s20, 1  ;;  %s1617_s7 = sshll.u32 %s1931_s23, 5 }
  0x2c   : > { %s2050_s10 = scalar_lea.hbm %s2198_s0, %s1617_s7  ;;  %s201_s27 = scalar_lea.vmem [#allocation4], %s1509_s26 }
  0x2d   : > { %s209_s28 = sshll.u32 %s201_s27, 4  ;;  %p2054_p7 = pnand %p1633_p4, %p37_p5  ;;  %s2052_s28 = int_to_ptr.vmem [resolvable:$true] %s209_s28 }
  0x2e   : > { %s198_s23 = scalar_lea.sflag [#allocation5], %s197_s20  ;;  %s1863_s6 = scalar_lea.hbm %s2050_s10, 32 }
  0x2f   : > { %p1864_p10 = scmp.ne.s32.totalorder %s2050_s10, %s1863_s6  ;;  %p1865_p11 = pneg %p2054_p7 }
  0x30   : > { %s1868_s13 = scalar_lea.hbm %s2198_s0, 96  ;;  %p1869_p0 = scmp.lt.u32.totalorder %s2050_s10, %s2198_s0 }
  0x31   : > { %p1866_p12 = pnand %p1865_p11, %p1864_p10  ;;  %p1870_p2 = scmp.lt.u32.totalorder %s1868_s13, %s1863_s6 }
  0x32   : > { %p1872_p6 = scmp.lt.u32.totalorder %s1863_s6, %s2050_s10 }
  0x33   : > { %p1867_p13 = pneg %p1866_p12  ;;  %p1871_p3 = por %p1870_p2, %p1869_p0 }
  0x35   : > { %p1873_p8 = por %p1872_p6, %p1871_p3 }
  0x37   : > { %p1874_p9 = pnand %p1873_p8, %p1867_p13 }
  0x39   : > { %1877 = shalt.err (!%p1874_p9)
}
  0x3a   : > { %s1878_s16 = scalar_lea.vmem %s2052_s28, 32  ;;  %s1936_s17 = smov [#allocation4]  }
  0x3b   : > { %p1879_p1 = scmp.ne.s32.totalorder %s2052_s28, %s1878_s16  ;;  %s1883_s18 = sshll.u32 %s1936_s17, 4  ;;  %s1884_s18 = int_to_ptr.vmem [resolvable:$false] %s1883_s18 }
  0x3c   : > { %s1885_s20 = scalar_lea.vmem %s1884_s18, 64  ;;  %p1886_p10 = scmp.lt.s32.totalorder %s2052_s28, %s1884_s18 }
  0x3d   : > { %p1881_p4 = pnand %p1879_p1, %p1865_p11  ;;  %p1887_p12 = scmp.lt.s32.totalorder %s1885_s20, %s1878_s16 }
  0x3f   : > { %p1882_p5 = pneg %p1881_p4  ;;  %p1888_p0 = por %p1887_p12, %p1886_p10 }
  0x41   : > { %p1889_p2 = pnand %p1888_p0, %p1882_p5 }
  0x43   : > { %1892 = shalt.err (!%p1889_p2)
}
  0x44   : > { %1631 = dma.hbm_to_vmem [thread:$0]  (!%p2054_p7), %s2050_s10, 32, %s2052_s28, %s198_s23  }
  0x45   : > { %p2211_p13 = scmp.ne.s32.totalorder %s2208_s25, 0 }
  0x46   : > { %s220_s26 = sand.u32 (!%p2211_p13), 1, %s1923_s21   ;;  %p2212_p11 = scmp.ne.s32.totalorder (!%p2211_p13), %s2207_s24, 0 }
  0x47   : > { %218 = sbr.rel (%p2211_p13) target bundleno = 795 (0x31b), region = 40  ;;  %s2086_s7 = sshll.u32 (!%p2211_p13), %s220_s26, 1 }
  0x48   : > { %s221_s8 = scalar_lea.sflag (!%p2211_p13), [#allocation5], %s220_s26  ;;  %s224_s9 = scalar_lea.vmem (!%p2211_p13), [#allocation4], %s2086_s7 }
  0x4e   : > { %1910 = dma.done.wait (%p2212_p11), %s221_s8, 32  }
  0x4f   : > { %1912 = vsyncadd (%p2212_p11), %s221_s8, 4294967264  ;;  %p2213_p3 = scmp.eq.s32.totalorder %s1992_s4, 0 }
  0x51   : > { %1914 = dma.done.wait (%p2213_p3), [#allocation7], 12288   ;;  %p2214_p7 = pmov %p2213_p3 }
  0x52   : > { %v1675_v1 = vld [vmem:[#allocation6 + $0x4] ss:$24 sps:$4 sm:$0xff]   ;;  %v1679_v3 = vld [vmem:[#allocation6] ss:$24 sps:$4 sm:$0xff]   ;;  %v1681_v5 = vld [vmem:[#allocation6 + $0x34] ss:$24 sps:$4 sm:$0xff]   ;;  %v357_v39 = vlaneseq }
  0x53   : > { %1916 = vsyncadd (%p2214_p7), [#allocation7], 4294955008  ;;  %v1677_v2 = vld [vmem:[#allocation6 + $0xc] ss:$24 sps:$4 sm:$0xff]   ;;  %892 = vmatprep.subr.bf16.mxu0 %v1675_v1  ;;  %v1680_v4 = vld [vmem:[#allocation6 + $0x8] ss:$24 sps:$4 sm:$0xff]  }
  0x54   : > { %933 = vmatprep.subr.bf16.mxu1 %v1677_v2  ;;  %893 = vmatpush1.bf16.msra.mxu0 %v1679_v3  ;;  %v1683_v6 = vld [vmem:[#allocation6 + $0x3c] ss:$24 sps:$4 sm:$0xff]   ;;  %v1685_v7 = vld [vmem:[#allocation6 + $0x30] ss:$24 sps:$4 sm:$0xff]   ;;  %v1689_v10 = vld [vmem:[#allocation6 + $0x6c] ss:$24 sps:$4 sm:$0xff]  }
  0x55   : > { %934 = vmatpush1.bf16.msra.mxu1 %v1680_v4  ;;  %894 = vmatprep.subr.bf16.mxu0 %v1681_v5  ;;  %v1686_v8 = vld [vmem:[#allocation6 + $0x38] ss:$24 sps:$4 sm:$0xff]   ;;  %v1687_v9 = vld [vmem:[#allocation6 + $0x64] ss:$24 sps:$4 sm:$0xff]   ;;  %v1692_v12 = vld [vmem:[#allocation6 + $0x68] ss:$24 sps:$4 sm:$0xff]  }
  0x56   : > { %935 = vmatprep.subr.bf16.mxu1 %v1683_v6  ;;  %v1691_v11 = vld [vmem:[#allocation6 + $0x60] ss:$24 sps:$4 sm:$0xff]   ;;  %v1693_v13 = vld [vmem:[#allocation6 + $0x94] ss:$24 sps:$4 sm:$0xff]   ;;  %v1697_v15 = vld [vmem:[#allocation6 + $0x90] ss:$24 sps:$4 sm:$0xff]  }
  0x57   : > { %v1695_v14 = vld [vmem:[#allocation6 + $0x9c] ss:$24 sps:$4 sm:$0xff]   ;;  %v1698_v16 = vld [vmem:[#allocation6 + $0x98] ss:$24 sps:$4 sm:$0xff]   ;;  %v1701_v18 = vld [vmem:[#allocation6 + $0xcc] ss:$24 sps:$4 sm:$0xff]  }
  0x58   : > { %895 = vmatpush1.bf16.msra.mxu0 %v1685_v7  ;;  %v1699_v17 = vld [vmem:[#allocation6 + $0xc4] ss:$24 sps:$4 sm:$0xff]   ;;  %v1703_v19 = vld [vmem:[#allocation6 + $0xc0] ss:$24 sps:$4 sm:$0xff]   ;;  %v1705_v21 = vld [vmem:[#allocation6 + $0xf4] ss:$24 sps:$4 sm:$0xff]  }
  0x59   : > { %936 = vmatpush1.bf16.msra.mxu1 %v1686_v8  ;;  %896 = vmatprep.subr.bf16.mxu0 %v1687_v9  ;;  %v1704_v20 = vld [vmem:[#allocation6 + $0xc8] ss:$24 sps:$4 sm:$0xff]   ;;  %v1707_v22 = vld [vmem:[#allocation6 + $0xfc] ss:$24 sps:$4 sm:$0xff]   ;;  %v1710_v24 = vld [vmem:[#allocation6 + $0xf8] ss:$24 sps:$4 sm:$0xff]  }
  0x5a   : > { %937 = vmatprep.subr.bf16.mxu1 %v1689_v10  ;;  %v1709_v23 = vld [vmem:[#allocation6 + $0xf0] ss:$24 sps:$4 sm:$0xff]   ;;  %v1711_v25 = vld [vmem:[#allocation6 + $0x124] ss:$24 sps:$4 sm:$0xff]   ;;  %v1715_v27 = vld [vmem:[#allocation6 + $0x120] ss:$24 sps:$4 sm:$0xff]  }
  0x5b   : > { %v1713_v26 = vld [vmem:[#allocation6 + $0x12c] ss:$24 sps:$4 sm:$0xff]   ;;  %v1716_v28 = vld [vmem:[#allocation6 + $0x128] ss:$24 sps:$4 sm:$0xff]   ;;  %v1719_v30 = vld [vmem:[#allocation6 + $0x15c] ss:$24 sps:$4 sm:$0xff]  }
  0x5c   : > { %897 = vmatpush1.bf16.msra.mxu0 %v1691_v11  ;;  %v1717_v29 = vld [vmem:[#allocation6 + $0x154] ss:$24 sps:$4 sm:$0xff]   ;;  %v1721_v31 = vld [vmem:[#allocation6 + $0x150] ss:$24 sps:$4 sm:$0xff]   ;;  %v1723_v33 = vld [vmem:[#allocation6 + $0x184] ss:$24 sps:$4 sm:$0xff]  }
  0x5d   : > { %938 = vmatpush1.bf16.msra.mxu1 %v1692_v12  ;;  %898 = vmatprep.subr.bf16.mxu0 %v1693_v13  ;;  %v1722_v32 = vld [vmem:[#allocation6 + $0x158] ss:$24 sps:$4 sm:$0xff]   ;;  %v1725_v34 = vld [vmem:[#allocation6 + $0x18c] ss:$24 sps:$4 sm:$0xff]   ;;  %v1728_v36 = vld [vmem:[#allocation6 + $0x188] ss:$24 sps:$4 sm:$0xff]  }
  0x5e   : > { %939 = vmatprep.subr.bf16.mxu1 %v1695_v14  ;;  %v1727_v35 = vld [vmem:[#allocation6 + $0x180] ss:$24 sps:$4 sm:$0xff]   ;;  %v1729_v37 = vld [vmem:[#allocation6 + $0x1b4] ss:$24 sps:$4 sm:$0xff]   ;;  %v1937_v40 = vmov 1966171168  }
  0x5f   : > { %v1731_v38 = vld [vmem:[#allocation6 + $0x1bc] ss:$24 sps:$4 sm:$0xff]   ;;  %v397_v41 = vunpack.c.l.s4 %v1937_v40  ;;  %v1733_v42 = vld [vmem:[#allocation6 + $0x1b0] ss:$24 sps:$4 sm:$0xff]   ;;  %v1737_v45 = vld [vmem:[#allocation6 + $0x1ec] ss:$24 sps:$4 sm:$0xff]  }
  0x60   : > { %899 = vmatpush1.bf16.msra.mxu0 %v1697_v15  ;;  %v1734_v43 = vld [vmem:[#allocation6 + $0x1b8] ss:$24 sps:$4 sm:$0xff]   ;;  %v1735_v44 = vld [vmem:[#allocation6 + $0x1e4] ss:$24 sps:$4 sm:$0xff]   ;;  %v2098_v46 = vshrl.u32 %v357_v39, 7  ;;  %vm1109_vm0 = vcmp.lt.s32.totalorder %v357_v39, 768 }
  0x61   : > { %940 = vmatpush1.bf16.msra.mxu1 %v1698_v16  ;;  %900 = vmatprep.subr.bf16.mxu0 %v1699_v17  ;;  %v398_v47 = vunpack.c.0.s8 %v397_v41  ;;  %v1739_v48 = vld [vmem:[#allocation6 + $0x1e0] ss:$24 sps:$4 sm:$0xff]   ;;  %v1741_v50 = vld [vmem:[#allocation6 + $0x214] ss:$24 sps:$4 sm:$0xff]   ;;  %v1745_v54 = vld [vmem:[#allocation6 + $0x210] ss:$24 sps:$4 sm:$0xff]  }
  0x62   : > { %941 = vmatprep.subr.bf16.mxu1 %v1701_v18  ;;  %v1740_v49 = vld [vmem:[#allocation6 + $0x1e8] ss:$24 sps:$4 sm:$0xff]   ;;  %v1743_v51 = vld [vmem:[#allocation6 + $0x21c] ss:$24 sps:$4 sm:$0xff]   ;;  %v1746_v55 = vld [vmem:[#allocation6 + $0x218] ss:$24 sps:$4 sm:$0xff]  }
  0x63   : > { %v2101_v52 = vsub.s32 %v398_v47, %v2098_v46  ;;  %v1516_v53 = vld.sshfl [vmem:[%s224_s9] sm:$0x11 pattern:$0x75316420]  ;;  %v1749_v58 = vld [vmem:[#allocation6 + $0x24c] ss:$24 sps:$4 sm:$0xff]  }
  0x64   : > { %901 = vmatpush1.bf16.msra.mxu0 %v1703_v19  ;;  %v395_v56 = vcombine.high %v1516_v53, %v1516_v53  ;;  %v1747_v57 = vld [vmem:[#allocation6 + $0x244] ss:$24 sps:$4 sm:$0xff]   ;;  %v1751_v60 = vld [vmem:[#allocation6 + $0x240] ss:$24 sps:$4 sm:$0xff]   ;;  %v1753_v62 = vld [vmem:[#allocation6 + $0x274] ss:$24 sps:$4 sm:$0xff]  }
  0x65   : > { %942 = vmatpush1.bf16.msra.mxu1 %v1704_v20  ;;  %902 = vmatprep.subr.bf16.mxu0 %v1705_v21  ;;  %v1752_v61 = vld [vmem:[#allocation6 + $0x248] ss:$24 sps:$4 sm:$0xff]   ;;  %v1755_v63 = vld [vmem:[#allocation6 + $0x27c] ss:$24 sps:$4 sm:$0xff]   ;;  %v1758_v1 = vld [vmem:[#allocation6 + $0x278] ss:$24 sps:$4 sm:$0xff]   ;;  %v2107_v11 = vrot.slane %v1516_v53, %v2101_v52 }
  0x66   : > { %943 = vmatprep.subr.bf16.mxu1 %v1707_v22  ;;  %v409_v59 = vrot.slane %v395_v56, %v2101_v52  ;;  %v1757_v0 = vld [vmem:[#allocation6 + $0x270] ss:$24 sps:$4 sm:$0xff]   ;;  %v1759_v2 = vld [vmem:[#allocation6 + $0x2a4] ss:$24 sps:$4 sm:$0xff]   ;;  %v1763_v4 = vld [vmem:[#allocation6 + $0x2a0] ss:$24 sps:$4 sm:$0xff]  }
  0x67   : > { %v1761_v3 = vld [vmem:[#allocation6 + $0x2ac] ss:$24 sps:$4 sm:$0xff]   ;;  %v1764_v5 = vld [vmem:[#allocation6 + $0x2a8] ss:$24 sps:$4 sm:$0xff]   ;;  %v1767_v7 = vld [vmem:[#allocation6 + $0x2dc] ss:$24 sps:$4 sm:$0xff]  }
  0x68   : > { %903 = vmatpush1.bf16.msra.mxu0 %v1709_v23  ;;  %924 = vmatprep.mubr.bf16.mxu0 %v409_v59  ;;  %v1765_v6 = vld [vmem:[#allocation6 + $0x2d4] ss:$24 sps:$4 sm:$0xff]   ;;  %v1769_v8 = vld [vmem:[#allocation6 + $0x2d0] ss:$24 sps:$4 sm:$0xff]   ;;  %v1776_v13 = vld [vmem:[#allocation6 + $0x44] ss:$24 sps:$4 sm:$0xff]  }
  0x69   : > { %944 = vmatpush1.bf16.msra.mxu1 %v1710_v24  ;;  %904 = vmatprep.subr.bf16.mxu0 %v1711_v25  ;;  %v1770_v9 = vld [vmem:[#allocation6 + $0x2d8] ss:$24 sps:$4 sm:$0xff]   ;;  %v1773_v10 = vld [vmem:[#allocation6 + $0x14] ss:$24 sps:$4 sm:$0xff]   ;;  %v1782_v17 = vld [vmem:[#allocation6 + $0xa4] ss:$24 sps:$4 sm:$0xff]  }
  0x6a   : > { %945 = vmatprep.subr.bf16.mxu1 %v1713_v26  ;;  %965 = vmatprep.mubr.bf16.mxu1 %v409_v59  ;;  %v1771_v12 = vld [vmem:[#allocation6 + $0x10] ss:$24 sps:$4 sm:$0xff]   ;;  %v1774_v14 = vld [vmem:[#allocation6 + $0x40] ss:$24 sps:$4 sm:$0xff]   ;;  %v1779_v15 = vld [vmem:[#allocation6 + $0x74] ss:$24 sps:$4 sm:$0xff]  }
  0x6b   : > { %v1777_v16 = vld [vmem:[#allocation6 + $0x70] ss:$24 sps:$4 sm:$0xff]   ;;  %v1780_v18 = vld [vmem:[#allocation6 + $0xa0] ss:$24 sps:$4 sm:$0xff]   ;;  %v1785_v19 = vld [vmem:[#allocation6 + $0xd4] ss:$24 sps:$4 sm:$0xff]  }
  0x6c   : > { %905 = vmatpush1.bf16.msra.mxu0 %v1715_v27  ;;  %v1783_v20 = vld [vmem:[#allocation6 + $0xd0] ss:$24 sps:$4 sm:$0xff]   ;;  %v1788_v21 = vld [vmem:[#allocation6 + $0x104] ss:$24 sps:$4 sm:$0xff]   ;;  %v1786_v22 = vld [vmem:[#allocation6 + $0x100] ss:$24 sps:$4 sm:$0xff]  }
  0x6d   : > { %946 = vmatpush1.bf16.msra.mxu1 %v1716_v28  ;;  %906 = vmatprep.subr.bf16.mxu0 %v1717_v29  ;;  %v1791_v23 = vld [vmem:[#allocation6 + $0x134] ss:$24 sps:$4 sm:$0xff]   ;;  %v1789_v24 = vld [vmem:[#allocation6 + $0x130] ss:$24 sps:$4 sm:$0xff]   ;;  %v1794_v25 = vld [vmem:[#allocation6 + $0x164] ss:$24 sps:$4 sm:$0xff]  }
  0x6e   : > { %947 = vmatprep.subr.bf16.mxu1 %v1719_v30  ;;  %v1792_v26 = vld [vmem:[#allocation6 + $0x160] ss:$24 sps:$4 sm:$0xff]   ;;  %v1797_v27 = vld [vmem:[#allocation6 + $0x194] ss:$24 sps:$4 sm:$0xff]   ;;  %v1795_v28 = vld [vmem:[#allocation6 + $0x190] ss:$24 sps:$4 sm:$0xff]  }
  0x6f   : > { %v1800_v29 = vld [vmem:[#allocation6 + $0x1c4] ss:$24 sps:$4 sm:$0xff]   ;;  %v1798_v30 = vld [vmem:[#allocation6 + $0x1c0] ss:$24 sps:$4 sm:$0xff]   ;;  %v1815_v40 = vld [vmem:[#allocation6 + $0x2b4] ss:$24 sps:$4 sm:$0xff]  }
  0x70   : > { %907 = vmatpush1.bf16.msra.mxu0 %v1721_v31  ;;  %v1803_v31 = vld [vmem:[#allocation6 + $0x1f4] ss:$24 sps:$4 sm:$0xff]   ;;  %v1813_v41 = vld [vmem:[#allocation6 + $0x2b0] ss:$24 sps:$4 sm:$0xff]   ;;  %v367_v56 = vsub.s32 2, %v2098_v46  ;;  %vm1395_vm1 = vcmask 3072  }
  0x71   : > { %948 = vmatpush1.bf16.msra.mxu1 %v1722_v32  ;;  %908 = vmatprep.subr.bf16.mxu0 %v1723_v33  ;;  %v1801_v32 = vld [vmem:[#allocation6 + $0x1f0] ss:$24 sps:$4 sm:$0xff]   ;;  %v1806_v33 = vld [vmem:[#allocation6 + $0x224] ss:$24 sps:$4 sm:$0xff]   ;;  %vm1407_vm2 = vcmp.eq.s32.totalorder %v2098_v46, 0  ;;  %p254_p6 = scmp.lt.s32.totalorder %s1992_s4, 2 }
  0x72   : > { %949 = vmatprep.subr.bf16.mxu1 %v1725_v34  ;;  %v1804_v34 = vld [vmem:[#allocation6 + $0x220] ss:$24 sps:$4 sm:$0xff]   ;;  %v1170_v47 = vld [vmem:[#allocation6 + $0x270] sm:$0x11]  ;;  %vm1428_vm4 = vcmask 9216  }
  0x73   : > { %s2220_s4 = smov (!%p254_p6, %s1992_s4), 2 }
  0x74   : > { %909 = vmatpush1.bf16.msra.mxu0 %v1727_v35  ;;  %v1809_v35 = vld [vmem:[#allocation6 + $0x254] ss:$24 sps:$4 sm:$0xff]   ;;  %s1515_s28 = sshll.u32 %s2220_s4, 1 }
  0x75   : > { %950 = vmatpush1.bf16.msra.mxu1 %v1728_v36  ;;  %910 = vmatprep.subr.bf16.mxu0 %v1729_v37  ;;  %v1807_v36 = vld [vmem:[#allocation6 + $0x250] ss:$24 sps:$4 sm:$0xff]   ;;  %v1812_v37 = vld [vmem:[#allocation6 + $0x284] ss:$24 sps:$4 sm:$0xff]   ;;  %s257_s6 = scalar_lea.vmem %s2203_s5, %s1515_s28 }
  0x76   : > { %951 = vmatprep.subr.bf16.mxu1 %v1731_v38  ;;  %v1810_v38 = vld [vmem:[#allocation6 + $0x280] ss:$24 sps:$4 sm:$0xff]  }
  0x78   : > { %911 = vmatpush1.bf16.msra.mxu0 %v1733_v42  ;;  %v1818_v42 = vld [vmem:[#allocation6 + $0x2e4] ss:$24 sps:$4 sm:$0xff]  }
  0x79   : > { %952 = vmatpush1.bf16.msra.mxu1 %v1734_v43  ;;  %912 = vmatprep.subr.bf16.mxu0 %v1735_v44  ;;  %v1816_v43 = vld [vmem:[#allocation6 + $0x2e0] ss:$24 sps:$4 sm:$0xff]   ;;  %v1938_v44 = vmov 0.0  }
  0x7a   : > { %953 = vmatprep.subr.bf16.mxu1 %v1737_v45  ;;  %1315 = vst [vmem:[#allocation2] sm:$0xc0] %v1938_v44  ;;  %1316 = vst [vmem:[#allocation2 + $0x8] sm:$0xc0] %v1938_v44  ;;  %v1021_v45 = vld [vmem:[#allocation6 + $0xc0] sm:$0x44] }
  0x7b   : > { %1317 = vst [vmem:[#allocation2 + $0x10] sm:$0xc0] %v1938_v44  ;;  %1318 = vst [vmem:[#allocation2 + $0x18] sm:$0xc0] %v1938_v44 }
  0x7c   : > { %913 = vmatpush1.bf16.msra.mxu0 %v1739_v48  ;;  %1319 = vst [vmem:[#allocation2 + $0x20] sm:$0xc0] %v1938_v44  ;;  %1320 = vst [vmem:[#allocation2 + $0x28] sm:$0xc0] %v1938_v44  ;;  %v1022_v48 = vld [vmem:[#allocation6 + $0xc8] sm:$0x44] }
  0x7d   : > { %954 = vmatpush1.bf16.msra.mxu1 %v1740_v49  ;;  %914 = vmatprep.subr.bf16.mxu0 %v1741_v50  ;;  %v1171_v49 = vld [vmem:[#allocation6 + $0x278] sm:$0x11]  ;;  %v1024_v50 = vunpack.c.l.bf16 %v1021_v45  ;;  %v1026_v53 = vunpack.c.l.bf16 %v1022_v48 }
  0x7e   : > { %955 = vmatprep.subr.bf16.mxu1 %v1743_v51  ;;  %v1173_v51 = vunpack.c.l.bf16 %v1170_v47 }
  0x80   : > { %915 = vmatpush1.bf16.msra.mxu0 %v1745_v54  ;;  %v1175_v54 = vunpack.c.l.bf16 %v1171_v49 }
  0x81   : > { %956 = vmatpush1.bf16.msra.mxu1 %v1746_v55  ;;  %916 = vmatprep.subr.bf16.mxu0 %v1747_v57  ;;  %v2113_v55 = vsub.s32 0, %v2098_v46  ;;  %v1025_v57 = vunpack.c.h.bf16 %v1021_v45 }
  0x82   : > { %957 = vmatprep.subr.bf16.mxu1 %v1749_v58  ;;  %v1174_v58 = vunpack.c.h.bf16 %v1170_v47 }
  0x84   : > { %917 = vmatpush1.bf16.msra.mxu0 %v1751_v60  ;;  %v363_v60 = vsub.s32 1, %v2098_v46 }
  0x85   : > { %958 = vmatpush1.bf16.msra.mxu1 %v1752_v61  ;;  %918 = vmatprep.subr.bf16.mxu0 %v1753_v62  ;;  %v371_v61 = vsub.s32 3, %v2098_v46  ;;  %v1027_v62 = vunpack.c.h.bf16 %v1022_v48 }
  0x86   : > { %959 = vmatprep.subr.bf16.mxu1 %v1755_v63  ;;  %v1176_v63 = vunpack.c.h.bf16 %v1171_v49 }
  0x88   : > { %919 = vmatpush1.bf16.msra.mxu0 %v1757_v0  ;;  %v1030_v0 = vmul.f32 10.0, %v1024_v50 }
  0x89   : > { %960 = vmatpush1.bf16.msra.mxu1 %v1758_v1  ;;  %920 = vmatprep.subr.bf16.mxu0 %v1759_v2  ;;  %v1179_v1 = vmul.f32 10.0, %v1173_v51  ;;  %v1032_v2 = vmul.f32 10.0, %v1026_v53 }
  0x8a   : > { %961 = vmatprep.subr.bf16.mxu1 %v1761_v3  ;;  %v1181_v3 = vmul.f32 10.0, %v1175_v54 }
  0x8c   : > { %921 = vmatpush1.bf16.msra.mxu0 %v1763_v4 }
  0x8d   : > { %962 = vmatpush1.bf16.msra.mxu1 %v1764_v5  ;;  %922 = vmatprep.subr.bf16.mxu0 %v1765_v6  ;;  %v1031_v6 = vmul.f32 10.0, %v1025_v57 }
  0x8e   : > { %963 = vmatprep.subr.bf16.mxu1 %v1767_v7  ;;  %v1180_v7 = vmul.f32 10.0, %v1174_v58 }
  0x90   : > { %923 = vmatpush1.bf16.msra.mxu0 %v1769_v8 }
  0x91   : > { %964 = vmatpush1.bf16.msra.mxu1 %v1770_v9  ;;  %974 = vmatprep.subr.bf16.mxu0 %v1773_v10  ;;  %v1033_v10 = vmul.f32 10.0, %v1027_v62 }
  0x93   : > { %925 = vmatmul.mubr.bf16.vlgmr.msra.gmra.mrb[0].mxu0 %v2107_v11 }
  0x94   : > { %966 = vmatmul.mubr.bf16.vlgmr.msra.gmra.mrb[0].mxu1 %v2107_v11  ;;  %975 = vmatpush1.bf16.msra.mxu0 %v1771_v12  ;;  %v1042_v12 = vrot.slane %v1030_v0, 5 }
  0x95   : > { %1006 = vmatprep.mubr.bf16.mxu0 %v409_v59  ;;  %976 = vmatprep.subr.bf16.mxu0 %v1776_v13  ;;  %v2119_v59 = vld [vmem:[%s2200_s2] sm:$0x3f]  ;;  %v1191_v13 = vrot.slane %v1179_v1, 1 }
  0x96   : > { %v360_v4 = vrot.slane %v2119_v59, %v2113_v55  ;;  %v368_v5 = vrot.slane %v2119_v59, %v367_v56  ;;  %v364_v8 = vrot.slane %v2119_v59, %v363_v60  ;;  %v372_v9 = vrot.slane %v2119_v59, %v371_v61 }
  0x98   : > { %977 = vmatpush1.bf16.msra.mxu0 %v1774_v14 }
  0x99   : > { %978 = vmatprep.subr.bf16.mxu0 %v1779_v15 }
  0x9c   : > { %979 = vmatpush1.bf16.msra.mxu0 %v1777_v16  ;;  %v1044_v16 = vrot.slane %v1032_v2, 5 }
  0x9d   : > { %980 = vmatprep.subr.bf16.mxu0 %v1782_v17  ;;  %v1193_v17 = vrot.slane %v1181_v3, 1 }
  0xa0   : > { %981 = vmatpush1.bf16.msra.mxu0 %v1780_v18 }
  0xa1   : > { %982 = vmatprep.subr.bf16.mxu0 %v1785_v19 }
  0xa4   : > { %983 = vmatpush1.bf16.msra.mxu0 %v1783_v20 }
  0xa5   : > { %984 = vmatprep.subr.bf16.mxu0 %v1788_v21  ;;  %v1043_v21 = vrot.slane %v1031_v6, 5 }
  0xa8   : > { %985 = vmatpush1.bf16.msra.mxu0 %v1786_v22  ;;  %v1192_v22 = vrot.slane %v1180_v7, 1 }
  0xa9   : > { %986 = vmatprep.subr.bf16.mxu0 %v1791_v23 }
  0xac   : > { %987 = vmatpush1.bf16.msra.mxu0 %v1789_v24 }
  0xad   : > { %988 = vmatprep.subr.bf16.mxu0 %v1794_v25 }
  0xb0   : > { %989 = vmatpush1.bf16.msra.mxu0 %v1792_v26  ;;  %v1045_v26 = vrot.slane %v1033_v10, 5 }
  0xb1   : > { %990 = vmatprep.subr.bf16.mxu0 %v1797_v27 }
  0xb4   : > { %991 = vmatpush1.bf16.msra.mxu0 %v1795_v28 }
  0xb5   : > { %992 = vmatprep.subr.bf16.mxu0 %v1800_v29 }
  0xb8   : > { %993 = vmatpush1.bf16.msra.mxu0 %v1798_v30 }
  0xb9   : > { %994 = vmatprep.subr.bf16.mxu0 %v1803_v31 }
  0xbc   : > { %995 = vmatpush1.bf16.msra.mxu0 %v1801_v32 }
  0xbd   : > { %996 = vmatprep.subr.bf16.mxu0 %v1806_v33 }
  0xc0   : > { %997 = vmatpush1.bf16.msra.mxu0 %v1804_v34 }
  0xc1   : > { %998 = vmatprep.subr.bf16.mxu0 %v1809_v35 }
  0xc4   : > { %999 = vmatpush1.bf16.msra.mxu0 %v1807_v36 }
  0xc5   : > { %1000 = vmatprep.subr.bf16.mxu0 %v1812_v37 }
  0xc8   : > { %1001 = vmatpush1.bf16.msra.mxu0 %v1810_v38 }
  0xc9   : > { %1002 = vmatprep.subr.bf16.mxu0 %v1815_v40 }
  0xcc   : > { %1003 = vmatpush1.bf16.msra.mxu0 %v1813_v41 }
  0xcd   : > { %1004 = vmatprep.subr.bf16.mxu0 %v1818_v42 }
  0xd0   : > { %1005 = vmatpush1.bf16.msra.mxu0 %v1816_v43 }
  0xd3   : > { %1007 = vmatmul.mubr.bf16.vlgmr.msra.gmra.mrb[4].mxu0 %v2107_v11  ;;  %v1182_v11 = vmul.f32 10.0, %v1176_v63 }
  0xd5   : > { %v1194_v27 = vrot.slane %v1182_v11, 1 }
 0x166   : > { %v926_v14 = vpop.f32.mrb[0].mxu0 }
 0x167   : > { %v967_v15 = vpop.f32.mrb[0].mxu1  ;;  %v927_v18 = vadd.f32 %v926_v14, %v360_v4  ;;  %v928_v20 = vpop.f32.mrb[1].mxu0 }
 0x168   : > { %v968_v19 = vadd.f32 %v967_v15, %v368_v5  ;;  %v969_v23 = vpop.f32.mrb[1].mxu1  ;;  %v929_v24 = vadd.f32 %v928_v20, %v364_v8  ;;  %v930_v28 = vpop.f32.mrb[2].mxu0 }
 0x169   : > { %v970_v25 = vadd.f32 %v969_v23, %v372_v9  ;;  %v971_v29 = vpop.f32.mrb[2].mxu1  ;;  %1015 = vst [vmem:[#allocation2] sm:$0x3] %v927_v18  ;;  %v1054_v30 = vadd.f32 %v1042_v12, %v927_v18  ;;  %v1114_v31 = vsub.f32 %v927_v18, %v1042_v12  ;;  %v1203_v32 = vadd.f32 %v1191_v13, %v927_v18  ;;  %v931_v34 = vpop.f32.mrb[3].mxu0  ;;  %v1023_v12 = vld [vmem:[#allocation6 + $0xd0] sm:$0x44] }
 0x16a   : > { %v1259_v33 = vsub.f32 %v927_v18, %v1191_v13  ;;  %1017 = vst [vmem:[#allocation2 + $0x10] sm:$0x3] %v968_v19  ;;  %v972_v35 = vpop.f32.mrb[3].mxu1  ;;  %v1056_v36 = vadd.f32 %v1044_v16, %v968_v19  ;;  %v1116_v37 = vsub.f32 %v968_v19, %v1044_v16  ;;  %v1205_v38 = vadd.f32 %v1193_v17, %v968_v19  ;;  %v1172_v13 = vld [vmem:[#allocation6 + $0x280] sm:$0x11] }
 0x16b   : > { %v1261_v40 = vsub.f32 %v968_v19, %v1193_v17  ;;  %1016 = vst [vmem:[#allocation2 + $0x8] sm:$0x3] %v929_v24  ;;  %1018 = vst [vmem:[#allocation2 + $0x18] sm:$0x3] %v970_v25  ;;  %v1055_v41 = vadd.f32 %v1043_v21, %v929_v24  ;;  %v1115_v42 = vsub.f32 %v929_v24, %v1043_v21  ;;  %v1028_v14 = vunpack.c.l.bf16 %v1023_v12 }
 0x16c   : > { %v1204_v43 = vadd.f32 %v1192_v22, %v929_v24  ;;  %v1260_v44 = vsub.f32 %v929_v24, %v1192_v22  ;;  %v1057_v45 = vadd.f32 %v1045_v26, %v970_v25  ;;  %v1117_v47 = vsub.f32 %v970_v25, %v1045_v26 }
 0x16d   : > { %v1206_v48 = vadd.f32 %v1194_v27, %v970_v25  ;;  %v1262_v49 = vsub.f32 %v970_v25, %v1194_v27  ;;  %v1066_v50 = vcombine.low %v1054_v30, %v1055_v41  ;;  %v1126_v51 = vcombine.low %v1114_v31, %v1115_v42 }
 0x16e   : > { %v1215_v53 = vcombine.low %v1203_v32, %v1204_v43  ;;  %v1271_v54 = vcombine.low %v1259_v33, %v1260_v44  ;;  %v1067_v57 = vcombine.low %v1056_v36, %v1057_v45  ;;  %v1127_v58 = vcombine.low %v1116_v37, %v1117_v47 }
 0x16f   : > { %v1216_v62 = vcombine.low %v1205_v38, %v1206_v48  ;;  %v1272_v63 = vcombine.low %v1261_v40, %v1262_v49  ;;  %v1075_v0 = vrot.slane %v1066_v50, %v2101_v52  ;;  %v1135_v1 = vrot.slane %v1126_v51, %v2101_v52 }
 0x170   : > { %v1224_v2 = vrot.slane %v1215_v53, %v2101_v52  ;;  %v1280_v3 = vrot.slane %v1271_v54, %v2101_v52  ;;  %v1082_v4 = vrot.slane %v1067_v57, %v2101_v52  ;;  %v1142_v5 = vrot.slane %v1127_v58, %v2101_v52 }
 0x171   : > { %v1231_v6 = vrot.slane %v1216_v62, %v2101_v52  ;;  %v1287_v7 = vrot.slane %v1272_v63, %v2101_v52  ;;  %v1177_v15 = vunpack.c.l.bf16 %v1172_v13  ;;  %v1029_v16 = vunpack.c.h.bf16 %v1023_v12 }
 0x172   : > { %v1090_v8 = vcombine.low %v1075_v0, %v1082_v4  ;;  %v1150_v9 = vcombine.low %v1135_v1, %v1142_v5  ;;  %v1178_v17 = vunpack.c.h.bf16 %v1172_v13  ;;  %v375_v18 = vsub.s32 4, %v2098_v46 }
 0x173   : > { %v1239_v10 = vcombine.low %v1224_v2, %v1231_v6  ;;  %v1295_v11 = vcombine.low %v1280_v3, %v1287_v7  ;;  %v379_v19 = vsub.s32 5, %v2098_v46  ;;  %v1034_v20 = vmul.f32 10.0, %v1028_v14 }
 0x174   : > { %v1183_v21 = vmul.f32 10.0, %v1177_v15  ;;  %v1035_v22 = vmul.f32 10.0, %v1029_v16  ;;  %v1184_v23 = vmul.f32 10.0, %v1178_v17  ;;  %v376_v24 = vrot.slane %v2119_v59, %v375_v18 }
 0x175   : > { %v380_v25 = vrot.slane %v2119_v59, %v379_v19  ;;  %v1046_v26 = vrot.slane %v1034_v20, 5  ;;  %v1097_v54 = vrot.slane %v1090_v8, %v2101_v52  ;;  %v1157_v57 = vrot.slane %v1150_v9, %v2101_v52 }
 0x176   : > { %v1195_v27 = vrot.slane %v1183_v21, 1  ;;  %v1047_v29 = vrot.slane %v1035_v22, 5  ;;  %v1196_v30 = vrot.slane %v1184_v23, 1  ;;  %v1246_v58 = vrot.slane %v1239_v10, %v2101_v52 }
 0x177   : > { %v1302_v62 = vrot.slane %v1295_v11, %v2101_v52  ;;  %v1333_v11 = vld [vmem:[%s2201_s3] sm:$0x3f] }
 0x178   : > { %v1338_v13 = vrot.slane %v1333_v11, %v2113_v55  ;;  %v1342_v14 = vrot.slane %v1333_v11, %v363_v60  ;;  %v1346_v16 = vrot.slane %v1333_v11, %v367_v56  ;;  %v1350_v22 = vrot.slane %v1333_v11, %v371_v61 }
 0x179   : > { %v1358_v60 = vrot.slane %v1333_v11, %v379_v19  ;;  %v1939_v61 = vmov 0  }
 0x17a   : > { %1673 = vset.pattern.permute.xlu0 %v1939_v61  ;;  %1674 = vset.pattern.permute.xlu1 %v1939_v61 }
 0x1a6   : > { %v1008_v28 = vpop.f32.mrb[4].mxu0 }
 0x1a7   : > { %v1009_v31 = vadd.f32 %v1008_v28, %v376_v24  ;;  %v1010_v32 = vpop.f32.mrb[5].mxu0 }
 0x1a8   : > { %v1011_v33 = vadd.f32 %v1010_v32, %v380_v25  ;;  %v1012_v34 = vpop.f32.mrb[6].mxu0  ;;  %v1354_v25 = vrot.slane %v1333_v11, %v375_v18 }
 0x1a9   : > { %1019 = vst [vmem:[#allocation2 + $0x20] sm:$0x3] %v1009_v31  ;;  %v1058_v35 = vadd.f32 %v1046_v26, %v1009_v31  ;;  %v1118_v36 = vsub.f32 %v1009_v31, %v1046_v26  ;;  %v1207_v37 = vadd.f32 %v1195_v27, %v1009_v31  ;;  %v1263_v38 = vsub.f32 %v1009_v31, %v1195_v27  ;;  %v1013_v40 = vpop.f32.mrb[7].mxu0 }
 0x1aa   : > { %1020 = vst [vmem:[#allocation2 + $0x28] sm:$0x3] %v1011_v33  ;;  %v1059_v41 = vadd.f32 %v1047_v29, %v1011_v33  ;;  %v1119_v42 = vsub.f32 %v1011_v33, %v1047_v29  ;;  %v1208_v43 = vadd.f32 %v1196_v30, %v1011_v33  ;;  %v1264_v59 = vsub.f32 %v1011_v33, %v1196_v30 }
 0x1ac   : > { %v1068_v44 = vcombine.low %v1058_v35, %v1059_v41  ;;  %v1128_v45 = vcombine.low %v1118_v36, %v1119_v42  ;;  %v1217_v47 = vcombine.low %v1207_v37, %v1208_v43  ;;  %v1273_v48 = vcombine.low %v1263_v38, %v1264_v59  ;;  %v1613_v36 = vld [vmem:[#allocation3] ss:$0 sm:$0xff] }
 0x1ae   : > { %v1089_v49 = vrot.slane %v1068_v44, %v2101_v52  ;;  %v1149_v50 = vrot.slane %v1128_v45, %v2101_v52  ;;  %v1238_v51 = vrot.slane %v1217_v47, %v2101_v52  ;;  %v1294_v53 = vrot.slane %v1273_v48, %v2101_v52 }
 0x1b0   : > { %v1104_v63 = vrot.slane %v1089_v49, %v2101_v52  ;;  %v1164_v0 = vrot.slane %v1149_v50, %v2101_v52  ;;  %v1253_v1 = vrot.slane %v1238_v51, %v2101_v52  ;;  %v1309_v2 = vrot.slane %v1294_v53, %v2101_v52 }
 0x1b2   : > { %v1105_v3 = vcombine.low %v1097_v54, %v1104_v63  ;;  %v1165_v4 = vcombine.low %v1157_v57, %v1164_v0  ;;  %v1254_v5 = vcombine.low %v1246_v58, %v1253_v1  ;;  %v1310_v6 = vcombine.low %v1302_v62, %v1309_v2 }
 0x1b3   : > { %v1414_v58 = vand.u32 127, %v357_v39 }
 0x1b4   : > { %1112 = vst.msk [vmem:[#allocation2 + $0x2] ss:$8 sm:$0xf] %vm1109_vm0, %v1105_v3  ;;  %1113 = vst.msk [vmem:[#allocation2 + $0x2] ss:$8 sm:$0x30] %vm1109_vm0, %v1105_v3 }
 0x1b5   : > { %1168 = vst.msk [vmem:[#allocation2 + $0x3] ss:$8 sm:$0xf] %vm1109_vm0, %v1165_v4  ;;  %1169 = vst.msk [vmem:[#allocation2 + $0x3] ss:$8 sm:$0x30] %vm1109_vm0, %v1165_v4 }
 0x1b6   : > { %1257 = vst.msk [vmem:[#allocation2 + $0x4] ss:$8 sm:$0xf] %vm1109_vm0, %v1254_v5  ;;  %1258 = vst.msk [vmem:[#allocation2 + $0x4] ss:$8 sm:$0x30] %vm1109_vm0, %v1254_v5 }
 0x1b7   : > { %1313 = vst.msk [vmem:[#allocation2 + $0x5] ss:$8 sm:$0xf] %vm1109_vm0, %v1310_v6  ;;  %1314 = vst.msk [vmem:[#allocation2 + $0x5] ss:$8 sm:$0x30] %vm1109_vm0, %v1310_v6 }
 0x1b8   : > { %vm1415_vm3 = vcmp.eq.s32.totalorder %v1414_v58, 0 }
 0x1be   : > { %v1321_v7 = vld [vmem:[#allocation2] sm:$0xff]  ;;  %v1322_v8 = vld [vmem:[#allocation2 + $0x8] sm:$0xff]  ;;  %v1323_v9 = vld [vmem:[#allocation2 + $0x10] sm:$0xff] }
 0x1bf   : > { %v1324_v10 = vld [vmem:[#allocation2 + $0x18] sm:$0xff]  ;;  %1819 = vtanh.f32 %v1321_v7  ;;  %v1325_v52 = vld [vmem:[#allocation2 + $0x20] sm:$0xff]  ;;  %v1326_v12 = vld [vmem:[#allocation2 + $0x28] sm:$0xff] }
 0x1c0   : > { %1821 = vtanh.f32 %v1322_v8 }
 0x1c1   : > { %1823 = vtanh.f32 %v1323_v9 }
 0x1c2   : > { %1825 = vtanh.f32 %v1324_v10 }
 0x1c3   : > { %1827 = vtanh.f32 %v1325_v52 }
 0x1c4   : > { %1829 = vtanh.f32 %v1326_v12 }
 0x1c9   : > { %v1820_v15 = vpop.eup %1819 }
 0x1ca   : > { %v1822_v17 = vpop.eup %1821  ;;  %v1365_v20 = vmul.f32 %v1820_v15, %v1338_v13 }
 0x1cb   : > { %v1824_v21 = vpop.eup %1823  ;;  %v1366_v23 = vmul.f32 %v1822_v17, %v1342_v14 }
 0x1cc   : > { %v1826_v24 = vpop.eup %1825  ;;  %v1367_v26 = vmul.f32 %v1824_v21, %v1346_v16 }
 0x1cd   : > { %v1371_v27 = vadd.f32 %v1366_v23, %v1365_v20  ;;  %v1828_v28 = vpop.eup %1827  ;;  %v1368_v29 = vmul.f32 %v1826_v24, %v1350_v22 }
 0x1ce   : > { %v1830_v56 = vpop.eup %1829  ;;  %v1369_v31 = vmul.f32 %v1828_v28, %v1354_v25 }
 0x1cf   : > { %v1372_v30 = vadd.f32 %v1371_v27, %v1367_v26  ;;  %v1370_v33 = vmul.f32 %v1830_v56, %v1358_v60 }
 0x1d1   : > { %v1373_v32 = vadd.f32 %v1372_v30, %v1368_v29 }
 0x1d3   : > { %v1374_v34 = vadd.f32 %v1373_v32, %v1369_v31 }
 0x1d5   : > { %v1375_v35 = vadd.f32 %v1374_v34, %v1370_v33 }
 0x1d7   : > { %1376 = vadd.xlane.f32.xlu0 %v1375_v35 }
 0x264   : > { %v1377_v18 = vpop.xlane.xlu0 %1376 }
 0x265   : > { %v1385_v37 = vadd.f32 %v1613_v36, %v1377_v18 }
 0x267   : > { %v1614_v38 = vmul.f32 -1.442695, %v1385_v37 }
 0x269   : > { %1831 = vpow2.f32 %v1614_v38 }
 0x273   : > { %v1832_v40 = vpop.eup %1831 }
 0x274   : > { %v1389_v41 = vadd.f32 1.0, %v1832_v40 }
 0x276   : > { %1833 = vrcp.f32 %v1389_v41 }
 0x280   : > { %v1834_v19 = vpop.eup %1833 }
 0x281   : > { %v1393_v42 = vrot.slane %v1834_v19, 2 }
 0x283   : > { %v1396_v43 = vsel %vm1395_vm1, %v1393_v42, 0.0 }
 0x284   : > { %v1397_v59 = vrot.slane %v1396_v43, 4 }
 0x286   : > { %v1398_v44 = vadd.f32 %v1397_v59, %v1396_v43 }
 0x288   : > { %v1399_v45 = vrot.slane %v1398_v44, 2 }
 0x28a   : > { %v1400_v47 = vadd.f32 %v1399_v45, %v1398_v44 }
 0x28c   : > { %v1401_v48 = vrot.slane %v1400_v47, 1 }
 0x28e   : > { %v1402_v49 = vadd.f32 %v1401_v48, %v1400_v47 }
 0x290   : > { %v1403_v50 = vadd.f32 %v1834_v19, %v1402_v49 }
 0x292   : > { %v1404_v51 = vmul.f32 0.2, %v1403_v50 }
 0x294   : > { %v1411_v53 = vrot.slane %v1404_v51, %v2113_v55 }
 0x296   : > { %v1412_v54 = vsel %vm1407_vm2, %v1411_v53, %v1834_v19 }
 0x297   : > { %1419 = vperm.xlu0 %1673, %v1412_v54   ;;  %v1416_v57 = vsub.f32 1.0, %v1412_v54 }
 0x299   : > { %1424 = vperm.xlu1 %1674, %v1416_v57  }
 0x316   : > { %v1420_v62 = vpop.permute.xlu0 %1419 }
 0x318   : > { %v1425_v63 = vpop.permute.xlu1 %1424 }
 0x319   : > { %v1427_v46 = vsel %vm1415_vm3, %v1420_v62, %v1425_v63 }
 0x31a   : > { %1429 = vst.msk [vmem:[%s257_s6] sm:$0x3] %vm1428_vm4, %v1427_v46 }
 0x31b PF: > { %p18_p8 = scmp.ge.s32.totalorder %s2017_s29, 5   ;;  %s2215_s20 = smov %s1923_s21 }
 0x31c   : > { %s2216_s21 = smov %s1927_s22  ;;  %s2217_s22 = smov %s2043_s19 }
 0x31d   : > { %s2218_s23 = smov %s2017_s29  ;;  %20 = sbr.rel (!%p18_p8) target bundleno = 7 (0x7), region = 88 }
 0x324   :  { %1449 = vsyncpa [#allocation5], 1 }
 0x325   :  { %1451 = vsyncpa [#allocation5 + $0x1], 1 }
 0x326   :  { %1452 = vsyncpa [#allocation7], 1 }

</bundles_post_ra>
